<compile_context>
chip_gen: v7x
topology: tpu7x:2x2x1
jax: 0.10.0
libtpu: 0.0.40
codegen_flags: <defaults>
</compile_context>

<pallas_src>
import functools

import jax
import jax.numpy as jnp
from jax.experimental import pallas as pl
from jax.experimental.pallas import tpu as pltpu

_LANE_CANDIDATES = (1024, 512, 256, 128)   # lane-dense widths (multiples of 128)
_MAX_TILE_ELEMS = 1024 * 1024              # 4 MiB f32 per block
_FUSED_MAX_ELEMS = 512 * 1024              # fused path: <= 2 MiB f32 slab (safe on v7x)
_VMEM_LIMIT_BYTES = 32 * 1024 * 1024       # safe on v5e/v6e (128 MiB) and v7x (64 MiB)


def _pick_layout(n: int):
    """Return (lane_w, n_pad): minimal pad so n_pad % lane_w == 0."""
    for w in _LANE_CANDIDATES:
        if n % w == 0:
            return w, n
    w = 128
    return w, pl.cdiv(n, w) * w


def _fused_softmax_kernel(x_ref, o_ref):
    # Whole slab resident in VMEM: one read, one write (2N HBM traffic).
    e = jnp.exp(x_ref[...].astype(jnp.float32))
    inv = 1.0 / jnp.sum(e)            # exact divide; approx recip too coarse for 1e-5 rtol
    o_ref[...] = (e * inv).astype(o_ref.dtype)


def _partial_sum_kernel(x_ref, part_ref, *, tile_rows, lane_w, n_valid, masked):
    # Each grid step emits its own partial sum -> axis is truly "parallel"
    # (megacore-friendly on v7x) and accumulation is pairwise-style.
    e = jnp.exp(x_ref[...].astype(jnp.float32))
    if masked:
        t = pl.program_id(0)
        rows = jax.lax.broadcasted_iota(jnp.int32, e.shape, 0)
        cols = jax.lax.broadcasted_iota(jnp.int32, e.shape, 1)
        flat = (t * tile_rows + rows) * lane_w + cols
        e = jnp.where(flat < n_valid, e, 0.0)   # drop pad + OOB-tail garbage
    part_ref[...] = jnp.full(part_ref.shape, jnp.sum(e), jnp.float32)


def _scale_kernel(inv_ref, x_ref, o_ref):
    # inv_ref: (1,1) f32 scalar in SMEM (already the reciprocal): pure
    # broadcast multiply, no per-step scalar divide on the critical path.
    inv = inv_ref[0, 0]
    e = jnp.exp(x_ref[...].astype(jnp.float32))
    o_ref[...] = (e * inv).astype(o_ref.dtype)


@jax.jit
def my_softmax(x: jax.Array) -> jax.Array:
    """exp(x) / sum(exp(x)) over all elements (matches the torch module)."""
    orig_shape = x.shape
    orig_dtype = x.dtype

    flat = x.reshape(-1)                       # native dtype, no astype pass
    n = flat.shape[0]
    lane_w, n_pad = _pick_layout(n)

    # ---------- fused single-launch path for VMEM-resident inputs ----------
    if n <= _FUSED_MAX_ELEMS:
        if n_pad == n:
            x2d = flat.reshape(n // lane_w, lane_w)   # lane-dense slab
        else:
            x2d = flat.reshape(1, n)                  # full-dim block, no pad copy
        out2d = pl.pallas_call(
            _fused_softmax_kernel,
            out_shape=jax.ShapeDtypeStruct(x2d.shape, orig_dtype),
            grid=(1,),
            in_specs=[pl.BlockSpec(x2d.shape, lambda i: (0, 0))],
            out_specs=pl.BlockSpec(x2d.shape, lambda i: (0, 0)),
            compiler_params=pltpu.CompilerParams(
                vmem_limit_bytes=_VMEM_LIMIT_BYTES),
        )(x2d)
        return out2d.reshape(orig_shape)

    # ---------------- large path: parallel partials + scale ----------------
    if n_pad != n:
        # Pad only to lane granularity (<=127 elems).  Pad value is irrelevant:
        # pass 1 masks by flat index; pass 2's pad region is sliced off.
        flat = jnp.pad(flat, (0, n_pad - n))
    rows = n_pad // lane_w
    x2d = flat.reshape(rows, lane_w)

    max_rows = _MAX_TILE_ELEMS // lane_w                  # always a multiple of 8
    tile_rows = rows if rows <= max_rows else max_rows    # full dim, or aligned tile
    num_tiles = pl.cdiv(rows, tile_rows)                  # no rounding-up of rows
    masked = (num_tiles * tile_rows * lane_w) != n

    partial_kernel = functools.partial(
        _partial_sum_kernel,
        tile_rows=tile_rows, lane_w=lane_w, n_valid=n, masked=masked)

    # Pass 1: per-tile partial sums of exp(x), f32, fully parallel grid axis.
    partials = pl.pallas_call(
        partial_kernel,
        out_shape=jax.ShapeDtypeStruct((num_tiles, 8, 128), jnp.float32),
        grid=(num_tiles,),
        in_specs=[pl.BlockSpec((tile_rows, lane_w), lambda t: (t, 0))],
        out_specs=pl.BlockSpec((1, 8, 128), lambda t: (t, 0, 0)),
        compiler_params=pltpu.CompilerParams(
            dimension_semantics=("parallel",),
            vmem_limit_bytes=_VMEM_LIMIT_BYTES),
    )(x2d)

    # Tiny second-stage reduce + exact reciprocal on the host-graph side.
    inv = (1.0 / jnp.sum(partials[:, 0, 0])).reshape(1, 1).astype(jnp.float32)

    # Pass 2: o = exp(x) * inv, parallel over tiles (OOB tail writes dropped).
    out2d = pl.pallas_call(
        _scale_kernel,
        out_shape=jax.ShapeDtypeStruct((rows, lane_w), orig_dtype),
        grid=(num_tiles,),
        in_specs=[
            pl.BlockSpec(memory_space=pltpu.MemorySpace.SMEM),
            pl.BlockSpec((tile_rows, lane_w), lambda t: (t, 0)),
        ],
        out_specs=pl.BlockSpec((tile_rows, lane_w), lambda t: (t, 0)),
        compiler_params=pltpu.CompilerParams(
            dimension_semantics=("parallel",),
            vmem_limit_bytes=_VMEM_LIMIT_BYTES),
    )(inv, x2d)

    if n_pad != n:
        return out2d.reshape(-1)[:n].reshape(orig_shape)
    return out2d.reshape(orig_shape)


if __name__ == "__main__":
    key = jax.random.PRNGKey(0)
    k1, k2, k3, k4 = jax.random.split(key, 4)

    # Primary: small NCHW input consistent with the exercise module (fused path).
    x = jax.random.normal(k1, (2, 4, 16, 16), dtype=jnp.float32)
    y = my_softmax(x)
    jax.block_until_ready(y)
    ref = jnp.exp(x) / jnp.sum(jnp.exp(x))
    assert y.shape == x.shape and y.dtype == x.dtype
    assert jnp.allclose(y, ref, rtol=1e-5, atol=1e-6), "mismatch vs reference"
    assert jnp.allclose(jnp.sum(y), 1.0, rtol=1e-5, atol=1e-5)

    # Odd element count (not a multiple of 128) -> fused path, no host pad.
    x_odd = jax.random.normal(k2, (3, 5, 7, 11), dtype=jnp.float32)
    y_odd = my_softmax(x_odd)
    jax.block_until_ready(y_odd)
    ref_odd = jnp.exp(x_odd) / jnp.sum(jnp.exp(x_odd))
    assert y_odd.shape == x_odd.shape
    assert jnp.allclose(y_odd, ref_odd, rtol=1e-5, atol=1e-6), "odd-shape mismatch"

    # Large aligned input -> two-pass path (parallel per-tile partials + scale).
    x_big = jax.random.normal(k3, (8, 16, 128, 128), dtype=jnp.float32)
    y_big = my_softmax(x_big)
    jax.block_until_ready(y_big)
    ref_big = jnp.exp(x_big) / jnp.sum(jnp.exp(x_big))
    assert jnp.allclose(y_big, ref_big, rtol=5e-4, atol=0.0), "multi-tile mismatch"
    assert jnp.allclose(jnp.sum(y_big), 1.0, rtol=1e-3, atol=1e-3)

    # Large odd input -> two-pass path with in-kernel tail masking.
    x_rag = jax.random.normal(k4, (3, 641, 547), dtype=jnp.float32)
    y_rag = my_softmax(x_rag)
    jax.block_until_ready(y_rag)
    ref_rag = jnp.exp(x_rag) / jnp.sum(jnp.exp(x_rag))
    assert y_rag.shape == x_rag.shape
    assert jnp.allclose(y_rag, ref_rag, rtol=5e-4, atol=0.0), "masked-tail mismatch"

    print("KERNEL_OK")
</pallas_src>

<mosaic_0001>
module attributes {stable_mosaic.version = 11 : i64} {
  func.func @_fused_softmax_kernel(%arg0: i32, %arg1: memref<2x1024xf32, #tpu.memory_space<vmem>>, %arg2: memref<2x1024xf32, #tpu.memory_space<vmem>>) attributes {dimension_semantics = [#tpu.dimension_semantics<arbitrary>], iteration_bounds = array<i64: 1>, scalar_prefetch = 0 : i64, scratch_operands = 0 : i64, tpu.core_type = #tpu.core_type<tc>, window_params = [{pipeline_mode = #tpu.pipeline_mode<synchronous>, transform_indices = @transform_0, window_bounds = array<i64: 2, 1024>}, {pipeline_mode = #tpu.pipeline_mode<synchronous>, transform_indices = @transform_1, window_bounds = array<i64: 2, 1024>}]} {
    %c0 = arith.constant 0 : index
    %c0_0 = arith.constant 0 : index
    %0 = vector.load %arg1[%c0, %c0_0] : memref<2x1024xf32, #tpu.memory_space<vmem>>, vector<2x1024xf32>
    %1 = math.exp %0 : vector<2x1024xf32>
    %2 = vector.shape_cast %1 : vector<2x1024xf32> to vector<1x2x1024xf32>
    %cst = arith.constant dense<0.000000e+00> : vector<1xf32>
    %3 = vector.multi_reduction <add>, %2, %cst [1, 2] : vector<1x2x1024xf32> to vector<1xf32>
    %4 = vector.shape_cast %3 : vector<1xf32> to vector<1x1x1xf32>
    %5 = vector.extract %4[0, 0, 0] : f32 from vector<1x1x1xf32>
    %cst_1 = arith.constant 1.000000e+00 : f32
    %6 = arith.divf %cst_1, %5 : f32
    %7 = vector.broadcast %6 : f32 to vector<2x1024xf32>
    %8 = arith.mulf %1, %7 : vector<2x1024xf32>
    %c0_2 = arith.constant 0 : index
    %c0_3 = arith.constant 0 : index
    %9 = vector.load %arg2[%c0_2, %c0_3] : memref<2x1024xf32, #tpu.memory_space<vmem>>, vector<2x1024xf32>
    tpu.vector_store %arg2[%c0_2, %c0_3], %8 {strides = array<i32>} : memref<2x1024xf32, #tpu.memory_space<vmem>>, vector<2x1024xf32>,
    return
  }
  func.func @transform_0(%arg0: i32) -> (i32, i32) {
    %c0_i32 = arith.constant 0 : i32
    %c0_i32_0 = arith.constant 0 : i32
    %c0_i32_1 = arith.constant 0 : i32
    return %c0_i32, %c0_i32_0 : i32, i32
  }
  func.func @transform_1(%arg0: i32) -> (i32, i32) {
    %c0_i32 = arith.constant 0 : i32
    %c0_i32_0 = arith.constant 0 : i32
    %c0_i32_1 = arith.constant 0 : i32
    return %c0_i32, %c0_i32_0 : i32, i32
  }
}

</mosaic_0001>

<bundles_post_ra>
// kernel: my_softmax.1
= control target key start
LH: loop header
LB: loop body
LE: loop exit
PB: predicated region body
PF: predicated region fallthrough
CT: control target
= control target key end

     0   :  { %v106_v4 = vmov 1983009808   ;;  %v20_v6 = vlaneseq  ;;  %vm58_vm0 = vcmask 1041408   ;;  %s137_s0 = inlined_call_operand.vmem [shape: f32[2,1024], index: 0, kind: input, shape index: {}]   ;;  %s138_s1 = inlined_call_operand.vmem [shape: f32[2,1024], index: 1, kind: output, shape index: {}]  }
   0x1   :  { %v8_v0 = vld [vmem:[%s137_s0] sm:$0xff]  ;;  %v9_v1 = vld [vmem:[%s137_s0 + $0x8] sm:$0xff]  ;;  %v18_v5 = vunpack.c.l.s4 %v106_v4 }
   0x2   :  { %v10_v2 = vmul.f32 1.442695, %v8_v0  ;;  %v12_v3 = vmul.f32 1.442695, %v9_v1  ;;  %v21_v8 = vshrl.u32 %v20_v6, 7 }
   0x3   :  { %v19_v7 = vunpack.c.0.s8 %v18_v5 }
   0x4   :  { %100 = vpow2.f32 %v10_v2 }
   0x5   :  { %102 = vpow2.f32 %v12_v3  ;;  %v22_v9 = vsub.s32 %v19_v7, %v21_v8 }
   0xe   :  { %v101_v10 = vpop.eup %100 }
   0xf   :  { %v103_v11 = vpop.eup %102  ;;  %v16_v12 = vcombine.high %v101_v10, %v101_v10  ;;  %v23_v13 = vrot.slane %v101_v10, %v22_v9 }
  0x10   :  { %v33_v14 = vcombine.high %v103_v11, %v103_v11  ;;  %v40_v17 = vrot.slane %v103_v11, %v22_v9 }
  0x11   :  { %v30_v15 = vrot.slane %v16_v12, %v22_v9  ;;  %v31_v16 = vcombine.high %v23_v13, %v23_v13  ;;  %v59_v18 = vsel %vm58_vm0, %v23_v13, 0.0 }
  0x12   :  { %v47_v23 = vrot.slane %v33_v14, %v22_v9  ;;  %v48_v24 = vcombine.high %v40_v17, %v40_v17  ;;  %v66_v27 = vsel %vm58_vm0, %v40_v17, 0.0 }
  0x13   :  { %v32_v19 = vcombine.high %v30_v15, %v30_v15  ;;  %v60_v20 = vsel %vm58_vm0, %v31_v16, 0.0  ;;  %v62_v21 = vsel %vm58_vm0, %v30_v15, 0.0 }
  0x14   :  { %v61_v22 = vadd.f32 %v60_v20, %v59_v18  ;;  %v49_v29 = vcombine.high %v47_v23, %v47_v23  ;;  %v68_v30 = vsel %vm58_vm0, %v48_v24, 0.0  ;;  %v70_v32 = vsel %vm58_vm0, %v47_v23, 0.0 }
  0x15   :  { %v64_v25 = vsel %vm58_vm0, %v32_v19, 0.0 }
  0x16   :  { %v63_v26 = vadd.f32 %v62_v21, %v61_v22  ;;  %v72_v34 = vsel %vm58_vm0, %v49_v29, 0.0 }
  0x18   :  { %v65_v28 = vadd.f32 %v64_v25, %v63_v26 }
  0x1a   :  { %v67_v31 = vadd.f32 %v66_v27, %v65_v28 }
  0x1c   :  { %v69_v33 = vadd.f32 %v68_v30, %v67_v31 }
  0x1e   :  { %v71_v35 = vadd.f32 %v70_v32, %v69_v33 }
  0x20   :  { %v73_v36 = vadd.f32 %v72_v34, %v71_v35 }
  0x22   :  { %74 = vadd.xlane.f32.xlu0 %v73_v36 }
  0xaf   :  { %v75_v37 = vpop.xlane.xlu0 %74 }
  0xb0   :  { %v76_v38 = vrot.slane %v75_v37, 4 }
  0xb2   :  { %v77_v39 = vadd.f32 %v76_v38, %v75_v37 }
  0xb4   :  { %v78_v40 = vrot.slane %v77_v39, 2 }
  0xb6   :  { %v79_v41 = vadd.f32 %v78_v40, %v77_v39 }
  0xb8   :  { %v80_v42 = vrot.slane %v79_v41, 1 }
  0xba   :  { %v81_v43 = vadd.f32 %v80_v42, %v79_v41 }
  0xbc   :  { %95 = vpush %v81_v43 }
  0xed   :  { %s96_s0 = spop %95 }
  0xee   :  { %v83_v44 = vstv %s96_s0 }
  0xef   :  { %104 = vrcp.f32 %v83_v44 }
  0xf9   :  { %v105_v45 = vpop.eup %104 }
  0xfa   :  { %97 = vpush %v105_v45 }
 0x12b   :  { %s98_s10 = spop %97 }
 0x12c   :  { %v86_v46 = vstv %s98_s10 }
 0x12d   :  { %v87_v47 = vmul.f32 %v101_v10, %v86_v46  ;;  %v88_v48 = vmul.f32 %v103_v11, %v86_v46 }
 0x12f   :  { %89 = vst [vmem:[%s138_s1] sm:$0xff] %v87_v47  ;;  %90 = vst [vmem:[%s138_s1 + $0x8] sm:$0xff] %v88_v48 }

</bundles_post_ra>
